<compile_context>
chip_gen: v7x
topology: tpu7x:2x2x1
jax: 0.10.0
libtpu: 0.0.40
codegen_flags: <defaults>
</compile_context>

<pallas_src>
import functools

import jax
import jax.numpy as jnp
from jax import lax
from jax.experimental import pallas as pl
from jax.experimental.pallas import tpu as pltpu


def mhsa_kernel(x_ref, wq_ref, wkv_ref, bq_ref, bkv_ref, out_ref, kv_ref,
                *, nhead):
    # Per (batch b, query-tile qi) step:
    #   x_ref   : (1, S, D)   full sequence for batch b (DMA'd once per b)
    #   wq_ref  : (D, D)      pre-transposed Wq   (x @ wq_ref == x @ Wq^T)
    #   wkv_ref : (D, 2D)     pre-transposed, fused [Wk^T | Wv^T]
    #   bq_ref  : (1, D)
    #   bkv_ref : (1, 2D)
    #   out_ref : (1, tq, D)  lane-dense output slab, already in (B, S, D) layout
    #   kv_ref  : (S, 2D) f32 VMEM scratch — cached K/V projections for batch b
    qi = pl.program_id(1)
    tq = out_ref.shape[1]
    D = wq_ref.shape[0]
    d_k = D // nhead

    # Compute the K/V projections for the whole sequence once per batch element
    # (query-tile axis is "arbitrary", so qi runs 0..nq-1 in order per b).
    @pl.when(qi == 0)
    def _():
        kv_ref[...] = (
            jnp.dot(x_ref[0], wkv_ref[...], preferred_element_type=jnp.float32)
            + bkv_ref[...]
        )

    # Q projection for this query tile only (all heads at once: N = D lanes).
    qs = pl.multiple_of(qi * tq, tq)
    x_q = x_ref[0, pl.ds(qs, tq), :]                              # (tq, D)
    q = (jnp.dot(x_q, wq_ref[...], preferred_element_type=jnp.float32)
         + bq_ref[...])                                           # (tq, D)

    kv = kv_ref[...]                                              # (S, 2D)
    scale = 1.0 / jnp.sqrt(jnp.float32(d_k))

    outs = []
    for h in range(nhead):                                        # static unroll
        q_h = q[:, h * d_k:(h + 1) * d_k]                         # (tq, d_k)
        k_h = kv[:, h * d_k:(h + 1) * d_k]                        # (S,  d_k)
        v_h = kv[:, D + h * d_k: D + (h + 1) * d_k]               # (S,  d_k)

        # scores = q_h @ k_h^T in native LHS.RHS^T form (no explicit transpose).
        s = lax.dot_general(q_h, k_h, (((1,), (1,)), ((), ())),
                            preferred_element_type=jnp.float32) * scale  # (tq,S)

        # Numerically stable softmax; denominator via EUP approx reciprocal.
        s = s - jnp.max(s, axis=-1, keepdims=True)
        e = jnp.exp(s)
        p = e * pl.reciprocal(jnp.sum(e, axis=-1, keepdims=True), approx=True)

        outs.append(jnp.dot(p.astype(v_h.dtype), v_h,
                            preferred_element_type=jnp.float32))  # (tq, d_k)

    # Single lane-dense store of the full (tq, D) slab (heads concatenated along
    # D exactly as torch's permute(0,2,1,3).reshape does).
    out_ref[0] = jnp.concatenate(outs, axis=-1).astype(out_ref.dtype)


def multi_head_self_attention(x, wq, wk, wv, bq, bk, bv, nhead, tq=None):
    """Self-attention forward: x is (B, S, D); weights are torch-style (out, in)."""
    B, S, D = x.shape
    assert D % nhead == 0

    if tq is None:
        tq = min(S, 256)                 # query-tile rows per grid step
    assert S % tq == 0, "query tile must divide S"
    nq = S // tq

    # Free layout plumbing in the wrapper: pre-transpose weights, fuse K|V.
    wq_t = wq.T                                            # (D, D)
    wkv_t = jnp.concatenate([wk.T, wv.T], axis=1)          # (D, 2D)
    bq2 = bq.reshape(1, D)
    bkv2 = jnp.concatenate([bk, bv]).reshape(1, 2 * D)

    kernel = functools.partial(mhsa_kernel, nhead=nhead)

    out = pl.pallas_call(
        kernel,
        out_shape=jax.ShapeDtypeStruct((B, S, D), x.dtype),
        grid_spec=pltpu.PrefetchScalarGridSpec(
            num_scalar_prefetch=0,
            grid=(B, nq),
            in_specs=[
                # Activation passed ONCE; constant over the query axis so it is
                # only re-DMA'd when b changes.
                pl.BlockSpec((1, S, D), lambda b, q: (b, 0, 0)),
                # Weights/biases: full blocks, constant index -> fetched once
                # and resident across all B*nq steps.
                pl.BlockSpec((D, D), lambda b, q: (0, 0)),
                pl.BlockSpec((D, 2 * D), lambda b, q: (0, 0)),
                pl.BlockSpec((1, D), lambda b, q: (0, 0)),
                pl.BlockSpec((1, 2 * D), lambda b, q: (0, 0)),
            ],
            # Lane-dense output slab directly in (B, S, D) layout.
            out_specs=pl.BlockSpec((1, tq, D), lambda b, q: (b, q, 0)),
            scratch_shapes=[pltpu.VMEM((S, 2 * D), jnp.float32)],
        ),
        compiler_params=pltpu.CompilerParams(
            dimension_semantics=("parallel", "arbitrary"),
            vmem_limit_bytes=64 * 1024 * 1024,
        ),
    )(x, wq_t, wkv_t, bq2, bkv2)
    return out


def _reference(x_q, x_k, x_v, wq, wk, wv, bq, bk, bv, nhead):
    """Pure-JAX reference reproducing the torch module semantics."""
    B, S, D = x_q.shape
    d_k = D // nhead

    def split_heads(x):
        return x.reshape(B, S, nhead, d_k).transpose(0, 2, 1, 3)

    q = split_heads(x_q @ wq.T + bq)
    k = split_heads(x_k @ wk.T + bk)
    v = split_heads(x_v @ wv.T + bv)
    scores = jnp.einsum("bhqd,bhkd->bhqk", q, k) / jnp.sqrt(jnp.float32(d_k))
    weights = jax.nn.softmax(scores, axis=-1)
    out = jnp.einsum("bhqk,bhkd->bhqd", weights, v)
    return out.transpose(0, 2, 1, 3).reshape(B, S, D)


if __name__ == "__main__":
    d_model, nhead = 32, 4
    B, S = 2, 8

    key = jax.random.PRNGKey(0)
    kx, kwq, kwk, kwv, kbq, kbk, kbv = jax.random.split(key, 7)

    # Deterministic parameter init (PyTorch Linear-style uniform(-1/sqrt(D), 1/sqrt(D))).
    bound = 1.0 / jnp.sqrt(jnp.float32(d_model))
    wq = jax.random.uniform(kwq, (d_model, d_model), jnp.float32, -bound, bound)
    wk = jax.random.uniform(kwk, (d_model, d_model), jnp.float32, -bound, bound)
    wv = jax.random.uniform(kwv, (d_model, d_model), jnp.float32, -bound, bound)
    bq = jax.random.uniform(kbq, (d_model,), jnp.float32, -bound, bound)
    bk = jax.random.uniform(kbk, (d_model,), jnp.float32, -bound, bound)
    bv = jax.random.uniform(kbv, (d_model,), jnp.float32, -bound, bound)

    x = jax.random.normal(kx, (B, S, d_model), jnp.float32)

    out = multi_head_self_attention(x, wq, wk, wv, bq, bk, bv, nhead)
    out = jax.block_until_ready(out)

    ref = _reference(x, x, x, wq, wk, wv, bq, bk, bv, nhead)
    assert out.shape == (B, S, d_model)
    # Tolerance loosened slightly vs exact f32: softmax denominator uses the
    # EUP approximate reciprocal (approx=True).
    assert jnp.allclose(out, ref, atol=5e-3, rtol=5e-3), "mismatch vs reference"

    print("KERNEL_OK")
</pallas_src>

<mosaic_0001>
module attributes {stable_mosaic.version = 11 : i64} {
  func.func @mhsa_kernel(%arg0: i32, %arg1: i32, %arg2: memref<1x8x32xf32, #tpu.memory_space<vmem>>, %arg3: memref<32x32xf32, #tpu.memory_space<vmem>>, %arg4: memref<32x64xf32, #tpu.memory_space<vmem>>, %arg5: memref<1x32xf32, #tpu.memory_space<vmem>>, %arg6: memref<1x64xf32, #tpu.memory_space<vmem>>, %arg7: memref<1x8x32xf32, #tpu.memory_space<vmem>>, %arg8: memref<8x64xf32, #tpu.memory_space<vmem>>) attributes {dimension_semantics = [#tpu.dimension_semantics<parallel>, #tpu.dimension_semantics<arbitrary>], iteration_bounds = array<i64: 2, 1>, scalar_prefetch = 0 : i64, scratch_operands = 1 : i64, tpu.core_type = #tpu.core_type<tc>, window_params = [{transform_indices = @transform_0, window_bounds = array<i64: 1, 8, 32>}, {pipeline_mode = #tpu.pipeline_mode<synchronous>, transform_indices = @transform_1, window_bounds = array<i64: 32, 32>}, {pipeline_mode = #tpu.pipeline_mode<synchronous>, transform_indices = @transform_2, window_bounds = array<i64: 32, 64>}, {pipeline_mode = #tpu.pipeline_mode<synchronous>, transform_indices = @transform_3, window_bounds = array<i64: 1, 32>}, {pipeline_mode = #tpu.pipeline_mode<synchronous>, transform_indices = @transform_4, window_bounds = array<i64: 1, 64>}, {transform_indices = @transform_5, window_bounds = array<i64: 1, 8, 32>}]} {
    %c0_i32 = arith.constant 0 : i32
    %0 = arith.cmpi eq, %arg1, %c0_i32 : i32
    %1 = arith.extui %0 : i1 to i32
    %c0_i32_0 = arith.constant 0 : i32
    %2 = arith.cmpi ne, %1, %c0_i32_0 : i32
    scf.if %2 {
      %c0_29 = arith.constant 0 : index
      %c0_30 = arith.constant 0 : index
      %c0_31 = arith.constant 0 : index
      %88 = vector.load %arg2[%c0_29, %c0_30, %c0_31] : memref<1x8x32xf32, #tpu.memory_space<vmem>>, vector<1x8x32xf32>
      %89 = vector.shape_cast %88 : vector<1x8x32xf32> to vector<8x32xf32>
      %c0_32 = arith.constant 0 : index
      %c0_33 = arith.constant 0 : index
      %90 = vector.load %arg4[%c0_32, %c0_33] : memref<32x64xf32, #tpu.memory_space<vmem>>, vector<32x64xf32>
      %cst_34 = arith.constant dense<0.000000e+00> : vector<8x64xf32>
      %91 = tpu.matmul %89, %90, %cst_34 {dimension_numbers = #tpu.dot_dimension_numbers<[1], [0], [0], [1], [0, 0, 1, 1], [], []>} : vector<8x32xf32>, vector<32x64xf32>, vector<8x64xf32> -> vector<8x64xf32>
      %c0_35 = arith.constant 0 : index
      %c0_36 = arith.constant 0 : index
      %92 = vector.load %arg6[%c0_35, %c0_36] : memref<1x64xf32, #tpu.memory_space<vmem>>, vector<1x64xf32>
      %93 = vector.broadcast %92 : vector<1x64xf32> to vector<8x64xf32>
      %94 = arith.addf %91, %93 : vector<8x64xf32>
      %c0_37 = arith.constant 0 : index
      %c0_38 = arith.constant 0 : index
      %95 = vector.load %arg8[%c0_37, %c0_38] : memref<8x64xf32, #tpu.memory_space<vmem>>, vector<8x64xf32>
      tpu.vector_store %arg8[%c0_37, %c0_38], %94 {strides = array<i32>} : memref<8x64xf32, #tpu.memory_space<vmem>>, vector<8x64xf32>,
    } else {
    }
    %c8_i32 = arith.constant 8 : i32
    %3 = arith.muli %arg1, %c8_i32 : i32
    %4 = tpu.assume_multiple %3, 8 : i32
    %c0 = arith.constant 0 : index
    %5 = arith.index_cast %4 : i32 to index
    %c0_1 = arith.constant 0 : index
    %6 = vector.load %arg2[%c0, %5, %c0_1] : memref<1x8x32xf32, #tpu.memory_space<vmem>>, vector<1x8x32xf32>
    %7 = vector.shape_cast %6 : vector<1x8x32xf32> to vector<8x32xf32>
    %c0_2 = arith.constant 0 : index
    %c0_3 = arith.constant 0 : index
    %8 = vector.load %arg3[%c0_2, %c0_3] : memref<32x32xf32, #tpu.memory_space<vmem>>, vector<32x32xf32>
    %cst = arith.constant dense<0.000000e+00> : vector<8x32xf32>
    %9 = tpu.matmul %7, %8, %cst {dimension_numbers = #tpu.dot_dimension_numbers<[1], [0], [0], [1], [0, 0, 1, 1], [], []>} : vector<8x32xf32>, vector<32x32xf32>, vector<8x32xf32> -> vector<8x32xf32>
    %c0_4 = arith.constant 0 : index
    %c0_5 = arith.constant 0 : index
    %10 = vector.load %arg5[%c0_4, %c0_5] : memref<1x32xf32, #tpu.memory_space<vmem>>, vector<1x32xf32>
    %11 = vector.broadcast %10 : vector<1x32xf32> to vector<8x32xf32>
    %12 = arith.addf %9, %11 : vector<8x32xf32>
    %c0_6 = arith.constant 0 : index
    %c0_7 = arith.constant 0 : index
    %13 = vector.load %arg8[%c0_6, %c0_7] : memref<8x64xf32, #tpu.memory_space<vmem>>, vector<8x64xf32>
    %cst_8 = arith.constant 8.000000e+00 : f32
    %14 = math.sqrt %cst_8 : f32
    %cst_9 = arith.constant 1.000000e+00 : f32
    %15 = arith.divf %cst_9, %14 : f32
    %16 = vector.extract_strided_slice %12 {offsets = [0, 0], sizes = [8, 8], strides = [1, 1]} : vector<8x32xf32> to vector<8x8xf32>
    %17 = vector.extract_strided_slice %13 {offsets = [0, 0], sizes = [8, 8], strides = [1, 1]} : vector<8x64xf32> to vector<8x8xf32>
    %18 = vector.extract_strided_slice %13 {offsets = [0, 32], sizes = [8, 8], strides = [1, 1]} : vector<8x64xf32> to vector<8x8xf32>
    %cst_10 = arith.constant dense<0.000000e+00> : vector<8x8xf32>
    %19 = tpu.matmul %16, %17, %cst_10 {dimension_numbers = #tpu.dot_dimension_numbers<[1], [1], [0], [0], [0, 0, 1, 0], [], []>} : vector<8x8xf32>, vector<8x8xf32>, vector<8x8xf32> -> vector<8x8xf32>
    %20 = vector.broadcast %15 : f32 to vector<8x8xf32>
    %21 = arith.mulf %19, %20 : vector<8x8xf32>
    %cst_11 = arith.constant dense<0xFF800000> : vector<8xf32>
    %22 = vector.multi_reduction <maximumf>, %21, %cst_11 [1] : vector<8x8xf32> to vector<8xf32>
    %23 = vector.shape_cast %22 : vector<8xf32> to vector<8x1xf32>
    %24 = vector.broadcast %23 : vector<8x1xf32> to vector<8x8xf32>
    %25 = arith.subf %21, %24 : vector<8x8xf32>
    %26 = math.exp %25 : vector<8x8xf32>
    %cst_12 = arith.constant dense<0.000000e+00> : vector<8xf32>
    %27 = vector.multi_reduction <add>, %26, %cst_12 [1] : vector<8x8xf32> to vector<8xf32>
    %28 = vector.shape_cast %27 : vector<8xf32> to vector<8x1xf32>
    %29 = tpu.reciprocal %28 {approx = true} : vector<8x1xf32> -> vector<8x1xf32>
    %30 = vector.broadcast %29 : vector<8x1xf32> to vector<8x8xf32>
    %31 = arith.mulf %26, %30 : vector<8x8xf32>
    %cst_13 = arith.constant dense<0.000000e+00> : vector<8x8xf32>
    %32 = tpu.matmul %31, %18, %cst_13 {dimension_numbers = #tpu.dot_dimension_numbers<[1], [0], [0], [1], [0, 0, 1, 1], [], []>} : vector<8x8xf32>, vector<8x8xf32>, vector<8x8xf32> -> vector<8x8xf32>
    %33 = vector.extract_strided_slice %12 {offsets = [0, 8], sizes = [8, 8], strides = [1, 1]} : vector<8x32xf32> to vector<8x8xf32>
    %34 = vector.extract_strided_slice %13 {offsets = [0, 8], sizes = [8, 8], strides = [1, 1]} : vector<8x64xf32> to vector<8x8xf32>
    %35 = vector.extract_strided_slice %13 {offsets = [0, 40], sizes = [8, 8], strides = [1, 1]} : vector<8x64xf32> to vector<8x8xf32>
    %cst_14 = arith.constant dense<0.000000e+00> : vector<8x8xf32>
    %36 = tpu.matmul %33, %34, %cst_14 {dimension_numbers = #tpu.dot_dimension_numbers<[1], [1], [0], [0], [0, 0, 1, 0], [], []>} : vector<8x8xf32>, vector<8x8xf32>, vector<8x8xf32> -> vector<8x8xf32>
    %37 = vector.broadcast %15 : f32 to vector<8x8xf32>
    %38 = arith.mulf %36, %37 : vector<8x8xf32>
    %cst_15 = arith.constant dense<0xFF800000> : vector<8xf32>
    %39 = vector.multi_reduction <maximumf>, %38, %cst_15 [1] : vector<8x8xf32> to vector<8xf32>
    %40 = vector.shape_cast %39 : vector<8xf32> to vector<8x1xf32>
    %41 = vector.broadcast %40 : vector<8x1xf32> to vector<8x8xf32>
    %42 = arith.subf %38, %41 : vector<8x8xf32>
    %43 = math.exp %42 : vector<8x8xf32>
    %cst_16 = arith.constant dense<0.000000e+00> : vector<8xf32>
    %44 = vector.multi_reduction <add>, %43, %cst_16 [1] : vector<8x8xf32> to vector<8xf32>
    %45 = vector.shape_cast %44 : vector<8xf32> to vector<8x1xf32>
    %46 = tpu.reciprocal %45 {approx = true} : vector<8x1xf32> -> vector<8x1xf32>
    %47 = vector.broadcast %46 : vector<8x1xf32> to vector<8x8xf32>
    %48 = arith.mulf %43, %47 : vector<8x8xf32>
    %cst_17 = arith.constant dense<0.000000e+00> : vector<8x8xf32>
    %49 = tpu.matmul %48, %35, %cst_17 {dimension_numbers = #tpu.dot_dimension_numbers<[1], [0], [0], [1], [0, 0, 1, 1], [], []>} : vector<8x8xf32>, vector<8x8xf32>, vector<8x8xf32> -> vector<8x8xf32>
    %50 = vector.extract_strided_slice %12 {offsets = [0, 16], sizes = [8, 8], strides = [1, 1]} : vector<8x32xf32> to vector<8x8xf32>
    %51 = vector.extract_strided_slice %13 {offsets = [0, 16], sizes = [8, 8], strides = [1, 1]} : vector<8x64xf32> to vector<8x8xf32>
    %52 = vector.extract_strided_slice %13 {offsets = [0, 48], sizes = [8, 8], strides = [1, 1]} : vector<8x64xf32> to vector<8x8xf32>
    %cst_18 = arith.constant dense<0.000000e+00> : vector<8x8xf32>
    %53 = tpu.matmul %50, %51, %cst_18 {dimension_numbers = #tpu.dot_dimension_numbers<[1], [1], [0], [0], [0, 0, 1, 0], [], []>} : vector<8x8xf32>, vector<8x8xf32>, vector<8x8xf32> -> vector<8x8xf32>
    %54 = vector.broadcast %15 : f32 to vector<8x8xf32>
    %55 = arith.mulf %53, %54 : vector<8x8xf32>
    %cst_19 = arith.constant dense<0xFF800000> : vector<8xf32>
    %56 = vector.multi_reduction <maximumf>, %55, %cst_19 [1] : vector<8x8xf32> to vector<8xf32>
    %57 = vector.shape_cast %56 : vector<8xf32> to vector<8x1xf32>
    %58 = vector.broadcast %57 : vector<8x1xf32> to vector<8x8xf32>
    %59 = arith.subf %55, %58 : vector<8x8xf32>
    %60 = math.exp %59 : vector<8x8xf32>
    %cst_20 = arith.constant dense<0.000000e+00> : vector<8xf32>
    %61 = vector.multi_reduction <add>, %60, %cst_20 [1] : vector<8x8xf32> to vector<8xf32>
    %62 = vector.shape_cast %61 : vector<8xf32> to vector<8x1xf32>
    %63 = tpu.reciprocal %62 {approx = true} : vector<8x1xf32> -> vector<8x1xf32>
    %64 = vector.broadcast %63 : vector<8x1xf32> to vector<8x8xf32>
    %65 = arith.mulf %60, %64 : vector<8x8xf32>
    %cst_21 = arith.constant dense<0.000000e+00> : vector<8x8xf32>
    %66 = tpu.matmul %65, %52, %cst_21 {dimension_numbers = #tpu.dot_dimension_numbers<[1], [0], [0], [1], [0, 0, 1, 1], [], []>} : vector<8x8xf32>, vector<8x8xf32>, vector<8x8xf32> -> vector<8x8xf32>
    %67 = vector.extract_strided_slice %12 {offsets = [0, 24], sizes = [8, 8], strides = [1, 1]} : vector<8x32xf32> to vector<8x8xf32>
    %68 = vector.extract_strided_slice %13 {offsets = [0, 24], sizes = [8, 8], strides = [1, 1]} : vector<8x64xf32> to vector<8x8xf32>
    %69 = vector.extract_strided_slice %13 {offsets = [0, 56], sizes = [8, 8], strides = [1, 1]} : vector<8x64xf32> to vector<8x8xf32>
    %cst_22 = arith.constant dense<0.000000e+00> : vector<8x8xf32>
    %70 = tpu.matmul %67, %68, %cst_22 {dimension_numbers = #tpu.dot_dimension_numbers<[1], [1], [0], [0], [0, 0, 1, 0], [], []>} : vector<8x8xf32>, vector<8x8xf32>, vector<8x8xf32> -> vector<8x8xf32>
    %71 = vector.broadcast %15 : f32 to vector<8x8xf32>
    %72 = arith.mulf %70, %71 : vector<8x8xf32>
    %cst_23 = arith.constant dense<0xFF800000> : vector<8xf32>
    %73 = vector.multi_reduction <maximumf>, %72, %cst_23 [1] : vector<8x8xf32> to vector<8xf32>
    %74 = vector.shape_cast %73 : vector<8xf32> to vector<8x1xf32>
    %75 = vector.broadcast %74 : vector<8x1xf32> to vector<8x8xf32>
    %76 = arith.subf %72, %75 : vector<8x8xf32>
    %77 = math.exp %76 : vector<8x8xf32>
    %cst_24 = arith.constant dense<0.000000e+00> : vector<8xf32>
    %78 = vector.multi_reduction <add>, %77, %cst_24 [1] : vector<8x8xf32> to vector<8xf32>
    %79 = vector.shape_cast %78 : vector<8xf32> to vector<8x1xf32>
    %80 = tpu.reciprocal %79 {approx = true} : vector<8x1xf32> -> vector<8x1xf32>
    %81 = vector.broadcast %80 : vector<8x1xf32> to vector<8x8xf32>
    %82 = arith.mulf %77, %81 : vector<8x8xf32>
    %cst_25 = arith.constant dense<0.000000e+00> : vector<8x8xf32>
    %83 = tpu.matmul %82, %69, %cst_25 {dimension_numbers = #tpu.dot_dimension_numbers<[1], [0], [0], [1], [0, 0, 1, 1], [], []>} : vector<8x8xf32>, vector<8x8xf32>, vector<8x8xf32> -> vector<8x8xf32>
    %84 = tpu.concatenate %32, %49, %66, %83 in 1 : vector<8x8xf32>, vector<8x8xf32>, vector<8x8xf32>, vector<8x8xf32> -> vector<8x32xf32>
    %c0_26 = arith.constant 0 : index
    %c0_27 = arith.constant 0 : index
    %c0_28 = arith.constant 0 : index
    %85 = vector.load %arg7[%c0_26, %c0_27, %c0_28] : memref<1x8x32xf32, #tpu.memory_space<vmem>>, vector<1x8x32xf32>
    %86 = vector.shape_cast %85 : vector<1x8x32xf32> to vector<8x32xf32>
    %87 = vector.shape_cast %84 : vector<8x32xf32> to vector<1x8x32xf32>
    tpu.vector_store %arg7[%c0_26, %c0_27, %c0_28], %87 {strides = array<i32>} : memref<1x8x32xf32, #tpu.memory_space<vmem>>, vector<1x8x32xf32>,
    return
  }
  func.func @transform_0(%arg0: i32, %arg1: i32) -> (i32, i32, i32) {
    %c0_i32 = arith.constant 0 : i32
    %c0_i32_0 = arith.constant 0 : i32
    %c0_i32_1 = arith.constant 0 : i32
    return %arg0, %c0_i32, %c0_i32_0 : i32, i32, i32
  }
  func.func @transform_1(%arg0: i32, %arg1: i32) -> (i32, i32) {
    %c0_i32 = arith.constant 0 : i32
    %c0_i32_0 = arith.constant 0 : i32
    %c0_i32_1 = arith.constant 0 : i32
    return %c0_i32, %c0_i32_0 : i32, i32
  }
  func.func @transform_2(%arg0: i32, %arg1: i32) -> (i32, i32) {
    %c0_i32 = arith.constant 0 : i32
    %c0_i32_0 = arith.constant 0 : i32
    %c0_i32_1 = arith.constant 0 : i32
    return %c0_i32, %c0_i32_0 : i32, i32
  }
  func.func @transform_3(%arg0: i32, %arg1: i32) -> (i32, i32) {
    %c0_i32 = arith.constant 0 : i32
    %c0_i32_0 = arith.constant 0 : i32
    %c0_i32_1 = arith.constant 0 : i32
    return %c0_i32, %c0_i32_0 : i32, i32
  }
  func.func @transform_4(%arg0: i32, %arg1: i32) -> (i32, i32) {
    %c0_i32 = arith.constant 0 : i32
    %c0_i32_0 = arith.constant 0 : i32
    %c0_i32_1 = arith.constant 0 : i32
    return %c0_i32, %c0_i32_0 : i32, i32
  }
  func.func @transform_5(%arg0: i32, %arg1: i32) -> (i32, i32, i32) {
    %c0_i32 = arith.constant 0 : i32
    %c0_i32_0 = arith.constant 0 : i32
    return %arg0, %arg1, %c0_i32 : i32, i32, i32
  }
}

</mosaic_0001>

<bundles_post_ra>
// kernel: tpu_custom_call.1
= control target key start
LH: loop header
LB: loop body
LE: loop exit
PB: predicated region body
PF: predicated region fallthrough
CT: control target
= control target key end

     0   :  { %10 = vsyncpa [#allocation4], 0  ;;  %s2231_s0 = inlined_call_operand.hbm [shape: f32[2,8,32], index: 0, kind: input, shape index: {}]   ;;  %s2232_s1 = inlined_call_operand.hbm [shape: f32[32,32], index: 1, kind: input, shape index: {}]   ;;  %s2233_s2 = inlined_call_operand.hbm [shape: f32[32,64], index: 2, kind: input, shape index: {}]   ;;  %s2234_s3 = inlined_call_operand.hbm [shape: f32[1,32], index: 3, kind: input, shape index: {}]   ;;  %s2235_s4 = inlined_call_operand.hbm [shape: f32[1,64], index: 4, kind: input, shape index: {}]   ;;  %s2236_s5 = inlined_call_operand.hbm [shape: f32[2,8,32], index: 5, kind: output, shape index: {}]  }
   0x1   :  { %12 = vsyncpa [#allocation4 + $0x1], 0 }
   0x2   :  { %13 = vsyncpa [#allocation7], 0 }
   0x3   :  { %14 = vsyncpa [#allocation10], 0 }
   0x4   :  { %15 = vsyncpa [#allocation5], 0 }
   0x5   :  { %17 = vsyncpa [#allocation5 + $0x1], 0  ;;  %s1860_s18 = smov 0   ;;  %s1862_s19 = smov 0  }
   0x6   :  { %s1864_s20 = smov 0   ;;  %s1866_s21 = smov 0  }
   0x7   :  { %s1868_s22 = smov 0   ;;  %s1870_s23 = smov 0  }
   0x8 LB: > { %s1304_s24 = sadd.s32 4294967295, %s1807_s23   ;;  %p1306_p0 = scmp.ge.s32.totalorder %s1807_s23, 1  ;;  %s1807_s23 = sphi %s1870_s23, %s23_s23   ;;  %s1803_s22 = sphi %s1868_s22, %s2260_s22   ;;  %s1799_s21 = sphi %s1866_s21, %s2259_s21   ;;  %s1795_s20 = sphi %s1864_s20, %s2258_s20   ;;  %s1791_s19 = sphi %s1862_s19, %s2257_s19   ;;  %s1787_s18 = sphi %s1860_s18, %s2256_s18  }
   0x9   : > { %p1894_p1 = scmp.eq.s32.totalorder %s1304_s24, 0  ;;  %p178_p2 = scmp.lt.s32.totalorder %s1807_s23, 3 }
   0xa   : > { %s1809_s27 = smov [#allocation6]   ;;  %s1810_s30 = smov [#allocation9]  }
   0xb   : > { %s2241_s25 = scalar_select %p1894_p1, 1, 0 }
   0xc   : > { %p1899_p3 = pnand %p1306_p0, %p178_p2  ;;  %s190_s28 = sshll.u32 %s1809_s27, 4  ;;  %s1903_s28 = int_to_ptr.vmem [resolvable:$true] %s190_s28 }
   0xd   : > { %s217_s6 = sshll.u32 %s1810_s30, 4  ;;  %s1811_s7 = smov [#allocation8]   ;;  %s1914_s6 = int_to_ptr.vmem [resolvable:$true] %s217_s6 }
   0xe   : > { %s2242_s26 = scalar_select %p1899_p3, 1, 0 }
   0xf   : > { %p1461_p4 = pneg %p1899_p3  ;;  %s1916_s8 = sshll.u32 %s1811_s7, 4  ;;  %s204_s8 = int_to_ptr.vmem [resolvable:$true] %s1916_s8 }
  0x10   : > { %s1575_s11 = scalar_lea.hbm %s2232_s1, 512 }
  0x11   : > { %p1910_p6 = pnand %p1461_p4, %p1894_p1  ;;  %p1576_p7 = scmp.ne.s32.totalorder %s2232_s1, %s1575_s11 }
  0x12   : > { %p1582_p11 = scmp.lt.u32.totalorder %s1575_s11, %s2232_s1 }
  0x13   : > { %p1926_p8 = pneg %p1910_p6 }
  0x15   : > { %p1578_p9 = pnand %p1926_p8, %p1576_p7 }
  0x17   : > { %p1579_p10 = pneg %p1578_p9 }
  0x19   : > { %p1584_p12 = pnand %p1582_p11, %p1579_p10 }
  0x1b   : > { %1587 = shalt.err (!%p1584_p12)
}
  0x1c   : > { %s1588_s17 = scalar_lea.vmem %s1903_s28, 512  ;;  %p1596_p4 = scmp.lt.s32.totalorder %s1903_s28, %s1903_s28 }
  0x1d   : > { %p1589_p13 = scmp.ne.s32.totalorder %s1903_s28, %s1588_s17  ;;  %p1597_p5 = scmp.lt.s32.totalorder %s1588_s17, %s1588_s17 }
  0x1f   : > { %p1591_p0 = pnand %p1589_p13, %p1926_p8  ;;  %p1598_p7 = por %p1597_p5, %p1596_p4 }
  0x21   : > { %p1592_p2 = pneg %p1591_p0 }
  0x23   : > { %p1599_p9 = pnand %p1598_p7, %p1592_p2 }
  0x25   : > { %1602 = shalt.err (!%p1599_p9)
}
  0x26   : > { %s1812_s27 = smov 128   ;;  %s1813_s30 = smov 8  }
  0x27   : > { %1464 = dma.hbm_to_vmem [thread:$0]  (!%p1910_p6), %s2232_s1, 512, %s1903_s28, [#allocation7], %s1812_s27, %s1812_s27, %s1813_s30  }
  0x28   : > { %s1603_s12 = scalar_lea.hbm %s2234_s3, 16 }
  0x29   : > { %p1604_p5 = scmp.ne.s32.totalorder %s2234_s3, %s1603_s12  ;;  %p1610_p12 = scmp.lt.u32.totalorder %s1603_s12, %s2234_s3 }
  0x2b   : > { %p1606_p10 = pnand %p1604_p5, %p1926_p8 }
  0x2d   : > { %p1607_p11 = pneg %p1606_p10 }
  0x2f   : > { %p1612_p13 = pnand %p1610_p12, %p1607_p11 }
  0x31   : > { %1615 = shalt.err (!%p1612_p13)
}
  0x32   : > { %s1616_s28 = scalar_lea.vmem %s1914_s6, 16  ;;  %s1623_s7 = scalar_lea.vmem %s1914_s6, 32 }
  0x33   : > { %p1617_p0 = scmp.ne.s32.totalorder %s1914_s6, %s1616_s28  ;;  %p1624_p7 = scmp.lt.s32.totalorder %s1914_s6, %s1914_s6 }
  0x34   : > { %p1625_p9 = scmp.lt.s32.totalorder %s1623_s7, %s1616_s28 }
  0x35   : > { %p1619_p2 = pnand %p1617_p0, %p1926_p8 }
  0x36   : > { %p1626_p5 = por %p1625_p9, %p1624_p7 }
  0x37   : > { %p1620_p4 = pneg %p1619_p2 }
  0x39   : > { %p1627_p10 = pnand %p1626_p5, %p1620_p4 }
  0x3b   : > { %1630 = shalt.err (!%p1627_p10)
}
  0x3c   : > { %1470 = dma.hbm_to_vmem [thread:$0]  (!%p1910_p6), %s2234_s3, 16, %s1914_s6, [#allocation10]  }
  0x3d   : > { %s1631_s13 = scalar_lea.hbm %s2233_s2, 512 }
  0x3e   : > { %p1632_p11 = scmp.ne.s32.totalorder %s2233_s2, %s1631_s13  ;;  %p1638_p0 = scmp.lt.u32.totalorder %s1631_s13, %s2233_s2 }
  0x40   : > { %p1634_p12 = pnand %p1632_p11, %p1926_p8 }
  0x42   : > { %p1635_p13 = pneg %p1634_p12 }
  0x44   : > { %p1640_p2 = pnand %p1638_p0, %p1635_p13 }
  0x46   : > { %1643 = shalt.err (!%p1640_p2)
}
  0x47   : > { %s1644_s7 = scalar_lea.vmem %s204_s8, 512  ;;  %p1652_p5 = scmp.lt.s32.totalorder %s204_s8, %s204_s8 }
  0x48   : > { %p1645_p4 = scmp.ne.s32.totalorder %s204_s8, %s1644_s7  ;;  %p1653_p10 = scmp.lt.s32.totalorder %s1644_s7, %s1644_s7 }
  0x4a   : > { %p1647_p7 = pnand %p1645_p4, %p1926_p8  ;;  %p1654_p3 = por %p1653_p10, %p1652_p5 }
  0x4c   : > { %p1648_p9 = pneg %p1647_p7 }
  0x4e   : > { %p1655_p1 = pnand %p1654_p3, %p1648_p9 }
  0x50   : > { %1658 = shalt.err (!%p1655_p1)
}
  0x51   : > { %1467 = dma.hbm_to_vmem [thread:$0]  (!%p1910_p6), %s2233_s2, 512, %s204_s8, [#allocation7], %s1812_s27, %s1812_s27, %s1813_s30  }
  0x52   : > { %s1814_s10 = smov [#allocation11]   ;;  %s1659_s15 = scalar_lea.hbm %s2235_s4, 16 }
  0x53   : > { %s228_s11 = sshll.u32 %s1814_s10, 4  ;;  %p1660_p1 = scmp.ne.s32.totalorder %s2235_s4, %s1659_s15  ;;  %s229_s11 = int_to_ptr.vmem [resolvable:$true] %s228_s11 }
  0x54   : > { %p1666_p12 = scmp.lt.u32.totalorder %s1659_s15, %s2235_s4 }
  0x55   : > { %p1662_p3 = pnand %p1660_p1, %p1926_p8 }
  0x57   : > { %p1663_p11 = pneg %p1662_p3 }
  0x59   : > { %p1668_p13 = pnand %p1666_p12, %p1663_p11 }
  0x5b   : > { %1671 = shalt.err (!%p1668_p13)
}
  0x5c   : > { %s1672_s8 = scalar_lea.vmem %s229_s11, 16  ;;  %s1679_s27 = scalar_lea.vmem %s229_s11, 32 }
  0x5d   : > { %p1673_p0 = scmp.ne.s32.totalorder %s229_s11, %s1672_s8  ;;  %p1680_p7 = scmp.lt.s32.totalorder %s229_s11, %s229_s11 }
  0x5e   : > { %p1681_p9 = scmp.lt.s32.totalorder %s1679_s27, %s1672_s8 }
  0x5f   : > { %p1675_p2 = pnand %p1673_p0, %p1926_p8 }
  0x60   : > { %p1682_p5 = por %p1681_p9, %p1680_p7 }
  0x61   : > { %p1676_p4 = pneg %p1675_p2 }
  0x63   : > { %p1683_p10 = pnand %p1682_p5, %p1676_p4 }
  0x65   : > { %1686 = shalt.err (!%p1683_p10)
}
  0x66   : > { %1473 = dma.hbm_to_vmem [thread:$0]  (!%p1910_p6), %s2235_s4, 16, %s229_s11, [#allocation10]  }
  0x67   : > { %s1305_s14 = sadd.s32 4294967294, %s1807_s23   ;;  %s35_s9 = sadd.s32 1, %s1803_s22 }
  0x68   : > { %p37_p8 = scmp.ge.s32.totalorder %s35_s9, 2  ;;  %s42_s29 = sadd.s32 1, %s1795_s20 }
  0x69   : > { %p49_p1 = scmp.ne.s32.totalorder %s1795_s20, %s1791_s19  ;;  %p50_p3 = scmp.eq.s32.totalorder %s1807_s23, 0 }
  0x6a   : > { %s2262_s9 = smov (%p37_p8, %s35_s9), 0  ;;  %p55_p12 = scmp.ne.s32.totalorder %s1791_s19, %s1787_s18 }
  0x6b   : > { %p2022_p11 = por %p50_p3, %p49_p1  ;;  %s39_s11 = ssub.s32 %s1803_s22, %s2262_s9 }
  0x6c   : > { %p165_p6 = scmp.eq.s32.totalorder %s1304_s24, 1  ;;  %p40_p13 = scmp.eq.s32.totalorder %s39_s11, 0 }
  0x6d   : > { %p2246_p0 = scmp.ne.s32.totalorder %s2241_s25, 0  ;;  %p171_p7 = scmp.eq.s32.totalorder %s1305_s14, 1 }
  0x6e   : > { %p2038_p4 = por %p165_p6, %p49_p1  ;;  %p1486_p5 = scmp.lt.s32.totalorder %s1807_s23, 2 }
  0x6f   : > { %p2034_p2 = por %p2246_p0, %p55_p12  ;;  %p2045_p9 = por %p171_p7, %p55_p12 }
  0x70   : > { %s2248_s13 = scalar_select %p2038_p4, 1, 0 }
  0x71   : > { %s2043_s15 = scalar_select %p40_p13, %s1795_s20, %s42_s29  }
  0x72   : > { %s2249_s16 = scalar_select %p2045_p9, 1, 0 }
  0x73   : > { %s239_s17 = sand.u32 1, %s1795_s20   ;;  %s1313_s24 = sshll.u32 %s1803_s22, 7 }
  0x74   : > { %s1312_s28 = sshll.u32 %s239_s17, 3  ;;  %s2055_s27 = scalar_lea.hbm %s2231_s0, %s1313_s24 }
  0x75   : > { %s243_s30 = scalar_lea.vmem [#allocation3], %s1312_s28  ;;  %p2059_p10 = pnand %p1486_p5, %p2022_p11 }
  0x76   : > { %s250_s6 = sshll.u32 %s243_s30, 4  ;;  %s240_s29 = scalar_lea.sflag [#allocation4], %s239_s17  ;;  %s2063_s6 = int_to_ptr.vmem [resolvable:$true] %s250_s6 }
  0x77   : > { %s1687_s11 = scalar_lea.hbm %s2055_s27, 128  ;;  %p1689_p1 = pneg %p2059_p10 }
  0x78   : > { %p1688_p8 = scmp.ne.s32.totalorder %s2055_s27, %s1687_s11  ;;  %s1692_s10 = scalar_lea.hbm %s2231_s0, 256 }
  0x79   : > { %p1693_p11 = scmp.lt.u32.totalorder %s2055_s27, %s2231_s0  ;;  %p1694_p6 = scmp.lt.u32.totalorder %s1692_s10, %s1687_s11 }
  0x7a   : > { %p1690_p3 = pnand %p1689_p1, %p1688_p8  ;;  %p1696_p0 = scmp.lt.u32.totalorder %s1687_s11, %s2055_s27 }
  0x7b   : > { %p1695_p13 = por %p1694_p6, %p1693_p11 }
  0x7c   : > { %p1691_p12 = pneg %p1690_p3 }
  0x7d   : > { %p1697_p7 = por %p1696_p0, %p1695_p13 }
  0x7f   : > { %p1698_p5 = pnand %p1697_p7, %p1691_p12 }
  0x81   : > { %1701 = shalt.err (!%p1698_p5)
}
  0x82   : > { %s1702_s17 = scalar_lea.vmem %s2063_s6, 128  ;;  %s1815_s30 = smov [#allocation3]  }
  0x83   : > { %p1703_p8 = scmp.ne.s32.totalorder %s2063_s6, %s1702_s17  ;;  %s1707_s24 = sshll.u32 %s1815_s30, 4  ;;  %s1708_s24 = int_to_ptr.vmem [resolvable:$false] %s1707_s24 }
  0x84   : > { %s1709_s28 = scalar_lea.vmem %s1708_s24, 256  ;;  %p1710_p4 = scmp.lt.s32.totalorder %s2063_s6, %s1708_s24 }
  0x85   : > { %p1705_p3 = pnand %p1703_p8, %p1689_p1  ;;  %p1711_p11 = scmp.lt.s32.totalorder %s1709_s28, %s1702_s17 }
  0x87   : > { %p1706_p9 = pneg %p1705_p3  ;;  %p1712_p6 = por %p1711_p11, %p1710_p4 }
  0x89   : > { %p1713_p13 = pnand %p1712_p6, %p1706_p9 }
  0x8b   : > { %1716 = shalt.err (!%p1713_p13)
}
  0x8c   : > { %1477 = dma.hbm_to_vmem [thread:$0]  (!%p2059_p10), %s2055_s27, 128, %s2063_s6, %s240_s29  }
  0x8d   : > { %p2251_p12 = scmp.ne.s32.totalorder %s2242_s26, 0 }
  0x8e   : > { %s2093_s11 = sand.u32 (!%p2251_p12), 1, %s1791_s19  }
  0x8f   : > { %259 = sbr.rel (%p2251_p12) target bundleno = 1387 (0x56b), region = 40  ;;  %s1315_s10 = sshll.u32 (!%p2251_p12), %s2093_s11, 3 }
  0x90   : > { %s262_s7 = scalar_lea.sflag (!%p2251_p12), [#allocation4], %s2093_s11  ;;  %s2099_s8 = scalar_lea.vmem (!%p2251_p12), [#allocation3], %s1315_s10 }
  0x96   : > { %1770 = dma.done.wait (%p2034_p2), %s262_s7, 128  }
  0x97   : > { %1772 = vsyncadd (%p2034_p2), %s262_s7, 4294967168  ;;  %p2252_p4 = scmp.ne.s32.totalorder %s2241_s25, 0 }
  0x99   : > { %1774 = dma.done.wait (%p2252_p4), [#allocation7], 1024  }
  0x9a   : > { %1776 = vsyncadd (%p2252_p4), [#allocation7], 4294966272 }
  0x9b   : > { %1778 = dma.done.wait (%p2252_p4), [#allocation10], 32  }
  0x9c   : > { %1780 = vsyncadd (%p2252_p4), [#allocation10], 4294967264  ;;  %v1816_v0 = vmov 0.0|0.0   ;;  %vm1817_vm0 = vmmov 0   ;;  %v1818_v1 = vmov 0.0   ;;  %v313_v2 = vld [vmem:[#allocation8] sm:$0xff] }
  0x9d   : > { %1429 = vmatprep.subr.bf16.mxu0 %v1816_v0  ;;  %1375 = vmatprep.mubr.msk.f32.mxu0 %vm1817_vm0, %v1818_v1  ;;  %v314_v3 = vld [vmem:[#allocation8 + $0x8] sm:$0xff]  ;;  %v315_v4 = vld [vmem:[#allocation8 + $0x10] sm:$0xff]  ;;  %v316_v6 = vld [vmem:[#allocation8 + $0x18] sm:$0xff]  ;;  %vm324_vm1 = vcmask 261120   ;;  %vm398_vm2 = vcmask 523264   ;;  %vm489_vm3 = vcmask 64512  }
  0x9e   : > { %1435 = vmatprep.subr.bf16.mxu1 %v1816_v0  ;;  %1386 = vmatprep.mubr.msk.f32.mxu1 %vm1817_vm0, %v1818_v1  ;;  %v1430_v5 = vpack.c.bf16 %v314_v3, %v313_v2  ;;  %v403_v7 = vld [vmem:[#allocation6] sm:$0xff]  ;;  %v404_v8 = vld [vmem:[#allocation6 + $0x8] sm:$0xff]  ;;  %v405_v9 = vld [vmem:[#allocation6 + $0x10] sm:$0xff]  ;;  %v1433_v11 = vpack.c.bf16 %v316_v6, %v315_v4  ;;  %s1819_s25 = smov 112   ;;  %s1820_s26 = smov 120   ;;  %vm1165_vm4 = vcmask 130048  }
  0x9f   : > { %v406_v10 = vld [vmem:[#allocation6 + $0x18] sm:$0xff]  ;;  %v1436_v12 = vpack.c.bf16 %v404_v8, %v403_v7  ;;  %v1321_v15 = vld [vmem:[#allocation11] ss:$0 sm:$0xff]  ;;  %v1323_v21 = vld [vmem:[#allocation9] ss:$0 sm:$0xff]  ;;  %s1821_s12 = smov 104  }
  0xa0   : > { %1431 = vmatpush3.bf16.msra.mxu0 %v1430_v5  ;;  %v1439_v13 = vpack.c.bf16 %v406_v10, %v405_v9  ;;  %v312_v14 = vld [vmem:[%s2099_s8] sm:$0xff]  ;;  %s1822_s27 = smov 96   ;;  %s1823_s6 = smov 80   ;;  %vm1167_vm5 = vcmask 195584  }
  0xa1   : > { %1432 = vmatprep.subr.bf16.mxu0 %v1816_v0  ;;  %1437 = vmatpush3.bf16.msra.mxu1 %v1436_v12  ;;  %s1824_s14 = smov 72   ;;  %s1825_s29 = smov 88  }
  0xa2   : > { %1438 = vmatprep.subr.bf16.mxu1 %v1816_v0  ;;  %s1826_s17 = smov 8   ;;  %s1827_s30 = smov 16  }
  0xa3   : > { %s1828_s24 = smov 24   ;;  %s1338_s28 = sshll.u32 %s1799_s21, 7 }
  0xa4   : > { %1434 = vmatpush3.bf16.msra.mxu0 %v1433_v11  ;;  %s307_s7 = scalar_lea.vmem [#allocation12], %s1315_s10  ;;  %s1171_s21 = scalar_lea.sflag [#allocation5], %s2093_s11 }
  0xa5   : > { %1389 = vmatprep.subr.mxu0 %v1818_v1  ;;  %1440 = vmatpush3.bf16.msra.mxu1 %v1439_v13  ;;  %s1185_s8 = sshll.u32 %s307_s7, 4  ;;  %p2253_p9 = scmp.ne.s32.totalorder %s2248_s13, 0  ;;  %s2183_s8 = int_to_ptr.vmem [resolvable:$true] %s1185_s8 }
  0xa6   : > { %1394 = vmatprep.subr.mxu1 %v1818_v1  ;;  %s1717_s10 = scalar_lea.vmem %s2183_s8, 128 }
  0xa7   : > { %1376 = vmatmul.mubr.msk.f32.vlgmr.msra.gmra.mrb[0].mxu0 %vm324_vm1, %v312_v14  ;;  %p1718_p2 = scmp.ne.s32.totalorder %s2183_s8, %s1717_s10 }
  0xa8   : > { %1391 = vmatprep.mubr.msk.f32.mxu0 %vm1817_vm0, %v1818_v1  ;;  %1387 = vmatmul.mubr.msk.f32.vlgmr.msra.gmra.mrb[0].mxu1 %vm324_vm1, %v312_v14 }
  0xa9   : > { %1396 = vmatprep.mubr.msk.f32.mxu1 %vm1817_vm0, %v1818_v1  ;;  %p1719_p10 = pnand %p1718_p2, %p2253_p9 }
  0xab   : > { %p1720_p1 = pneg %p1719_p10 }
 0x17a   : > { %v394_v16 = vpop.f32.mrb[0].mxu0 }
 0x17b   : > { %v395_v17 = vadd.f32 %v1321_v15, %v394_v16  ;;  %v1377_v18 = vpop.f32.mrb[1].mxu0  ;;  %v484_v19 = vpop.f32.mrb[0].mxu1 }
 0x17c   : > { %v1388_v20 = vpop.f32.mrb[1].mxu1  ;;  %v485_v23 = vadd.f32 %v1323_v21, %v484_v19 }
 0x17d   : > { %399 = vst.msk [vmem:[#allocation2] sm:$0xff] %vm398_vm2, %v395_v17 }
 0x184   : > { %v2126_v22 = vld [vmem:[#allocation2] sm:$0xff] }
 0x185   : > { %822 = vrot.lane.b32.xlu1 %v2126_v22, %s1819_s25  ;;  %656 = vrot.lane.b32.xlu0 %v2126_v22, %s1820_s26 }
 0x186   : > { %1390 = vmatpush3.xpose.msk.msra.mxu0 %vm489_vm3, %v2126_v22 }
 0x187   : > { %1399 = vmatprep.subr.mxu0 %v1818_v1 }
 0x189   : > { %1392 = vmatmul.mubr.msk.f32.vlgmr.msra.gmra.mrb[2].mxu0 %vm489_vm3, %v485_v23  ;;  %820 = vrot.lane.b32.xlu1 %v485_v23, %s1819_s25 }
 0x18a   : > { %654 = vrot.lane.b32.xlu0 %v485_v23, %s1820_s26  ;;  %1401 = vmatprep.mubr.msk.f32.mxu0 %vm1817_vm0, %v1818_v1 }
 0x18d   : > { %986 = vrot.lane.b32.xlu1 %v485_v23, %s1821_s12 }
 0x18e   : > { %988 = vrot.lane.b32.xlu0 %v2126_v22, %s1821_s12  ;;  %s2181_s12 = scalar_lea.hbm %s2236_s5, %s1338_s28 }
 0x1f7   : > { %v657_v24 = vpop.permute.xlu0 %656  ;;  %v823_v25 = vpop.permute.xlu1 %822 }
 0x1f8   : > { %1400 = vmatpush3.xpose.msk.msra.mxu0 %vm489_vm3, %v657_v24 }
 0x1f9   : > { %1409 = vmatprep.subr.mxu0 %v1818_v1 }
 0x1fb   : > { %v821_v27 = vpop.permute.xlu1 %820 }
 0x1fc   : > { %v655_v26 = vpop.permute.xlu0 %654 }
 0x1fd   : > { %1402 = vmatmul.mubr.msk.f32.vlgmr.msra.gmra.mrb[4].mxu0 %vm489_vm3, %v655_v26 }
 0x1fe   : > { %1410 = vmatpush3.xpose.msk.msra.mxu0 %vm489_vm3, %v823_v25  ;;  %1411 = vmatprep.mubr.msk.f32.mxu0 %vm1817_vm0, %v1818_v1 }
 0x1ff   : > { %1419 = vmatprep.subr.mxu0 %v1818_v1  ;;  %v987_v29 = vpop.permute.xlu1 %986 }
 0x200   : > { %v989_v28 = vpop.permute.xlu0 %988 }
 0x201   : > { %1412 = vmatmul.mubr.msk.f32.vlgmr.msra.gmra.mrb[6].mxu0 %vm489_vm3, %v821_v27 }
 0x202   : > { %1420 = vmatpush3.xpose.msk.msra.mxu0 %vm489_vm3, %v989_v28  ;;  %1421 = vmatprep.mubr.msk.f32.mxu0 %vm1817_vm0, %v1818_v1 }
 0x205   : > { %1422 = vmatmul.mubr.msk.f32.vlgmr.msra.gmra.mrb[8].mxu0 %vm489_vm3, %v987_v29 }
 0x25c   : > { %v562_v30 = vpop.f32.mrb[2].mxu0 }
 0x25d   : > { %v566_v31 = vmul.f32 0.35355338, %v562_v30  ;;  %v1393_v32 = vpop.f32.mrb[3].mxu0 }
 0x25f   : > { %v567_v33 = vsel %vm489_vm3, %v566_v31, -inf }
 0x260   : > { %568 = vmax.xlane.f32.xlu0 %v567_v33 }
 0x2d0   : > { %v728_v34 = vpop.f32.mrb[4].mxu0 }
 0x2d1   : > { %v732_v35 = vmul.f32 0.35355338, %v728_v34  ;;  %v1403_v36 = vpop.f32.mrb[5].mxu0 }
 0x2d3   : > { %v733_v37 = vsel %vm489_vm3, %v732_v35, -inf }
 0x2d4   : > { %734 = vmax.xlane.f32.xlu1 %v733_v37  ;;  %v894_v38 = vpop.f32.mrb[6].mxu0 }
 0x2d5   : > { %v898_v39 = vmul.f32 0.35355338, %v894_v38  ;;  %v1413_v40 = vpop.f32.mrb[7].mxu0 }
 0x2d7   : > { %v899_v41 = vsel %vm489_vm3, %v898_v39, -inf }
 0x2d8   : > { %900 = vmax.xlane.f32.xlu0 %v899_v41  ;;  %v1060_v42 = vpop.f32.mrb[8].mxu0 }
 0x2d9   : > { %v1064_v43 = vmul.f32 0.35355338, %v1060_v42  ;;  %v1423_v44 = vpop.f32.mrb[9].mxu0 }
 0x2db   : > { %v1065_v45 = vsel %vm489_vm3, %v1064_v43, -inf }
 0x2dc   : > { %1066 = vmax.xlane.f32.xlu0 %v1065_v45 }
 0x2e5   : > { %578 = vrot.lane.b32.xlu1 %v2126_v22, %s1822_s27  ;;  %s1829_s27 = smov [#allocation12]  }
 0x2ed   : > { %v569_v46 = vpop.xlane.xlu0 %568 }
 0x2ee   : > { %v570_v47 = vsub.f32 %v566_v31, %v569_v46 }
 0x2f0   : > { %v571_v48 = vmul.f32 1.442695, %v570_v47 }
 0x2f2   : > { %1559 = vpow2.f32 %v571_v48 }
 0x2fc   : > { %v1560_v49 = vpop.eup %1559 }
 0x2fd   : > { %v573_v50 = vsel %vm489_vm3, %v1560_v49, 0.0 }
 0x309   : > { %574 = vadd.xlane.f32.xlu1 %v573_v50 }
 0x361   : > { %v735_v51 = vpop.xlane.xlu1 %734 }
 0x362   : > { %v736_v52 = vsub.f32 %v732_v35, %v735_v51 }
 0x364   : > { %v737_v53 = vmul.f32 1.442695, %v736_v52 }
 0x365   : > { %v579_v54 = vpop.permute.xlu1 %578  ;;  %v901_v55 = vpop.xlane.xlu0 %900 }
 0x366   : > { %1561 = vpow2.f32 %v737_v53  ;;  %v902_v56 = vsub.f32 %v898_v39, %v901_v55  ;;  %1395 = vmatpush3.msra.mxu1 %v579_v54 }
 0x367   : > { %1404 = vmatprep.subr.mxu1 %v1818_v1 }
 0x368   : > { %v903_v57 = vmul.f32 1.442695, %v902_v56 }
 0x369   : > { %v1067_v58 = vpop.xlane.xlu0 %1066 }
 0x36a   : > { %1563 = vpow2.f32 %v903_v57  ;;  %v1068_v59 = vsub.f32 %v1064_v43, %v1067_v58 }
 0x36c   : > { %v1069_v60 = vmul.f32 1.442695, %v1068_v59 }
 0x36e   : > { %1565 = vpow2.f32 %v1069_v60 }
 0x370   : > { %v1562_v61 = vpop.eup %1561 }
 0x371   : > { %v739_v62 = vsel %vm489_vm3, %v1562_v61, 0.0 }
 0x372   : > { %740 = vadd.xlane.f32.xlu0 %v739_v62 }
 0x374   : > { %v1564_v63 = vpop.eup %1563 }
 0x375   : > { %v905_v0 = vsel %vm489_vm3, %v1564_v63, 0.0 }
 0x376   : > { %906 = vadd.xlane.f32.xlu1 %v905_v0 }
 0x378   : > { %v1566_v2 = vpop.eup %1565 }
 0x379   : > { %v1071_v3 = vsel %vm489_vm3, %v1566_v2, 0.0 }
 0x37a   : > { %1072 = vadd.xlane.f32.xlu0 %v1071_v3 }
 0x387   : > { %910 = vrot.lane.b32.xlu1 %v2126_v22, %s1823_s6  ;;  %s1721_s6 = sshll.u32 %s1829_s27, 4  ;;  %s1722_s6 = int_to_ptr.vmem [resolvable:$false] %s1721_s6 }
 0x388   : > { %p1724_p0 = scmp.lt.s32.totalorder %s2183_s8, %s1722_s6 }
 0x38b   : > { %1076 = vrot.lane.b32.xlu1 %v2126_v22, %s1824_s14  ;;  %s1723_s14 = scalar_lea.vmem %s1722_s6, 256 }
 0x38c   : > { %p1725_p7 = scmp.lt.s32.totalorder %s1723_s14, %s1717_s10 }
 0x38e   : > { %p1726_p5 = por %p1725_p7, %p1724_p0 }
 0x390   : > { %744 = vrot.lane.b32.xlu0 %v2126_v22, %s1825_s29  ;;  %p1727_p8 = pnand %p1726_p5, %p1720_p1 }
 0x396   : > { %v575_v4 = vpop.xlane.xlu1 %574 }
 0x397   : > { %1567 = vrcp.f32 %v575_v4 }
 0x3a1   : > { %v1568_v5 = vpop.eup %1567 }
 0x3a2   : > { %v577_v6 = vmul.f32 %v1568_v5, %v1560_v49 }
 0x3a4   : > { %1397 = vmatmul.mubr.msk.f32.vlgmr.msra.gmra.mrb[2].mxu1 %vm489_vm3, %v577_v6 }
 0x3a5   : > { %1406 = vmatprep.mubr.msk.f32.mxu1 %vm1817_vm0, %v1818_v1 }
 0x3ff   : > { %v741_v7 = vpop.xlane.xlu0 %740 }
 0x400   : > { %1569 = vrcp.f32 %v741_v7 }
 0x403   : > { %v907_v8 = vpop.xlane.xlu1 %906 }
 0x404   : > { %1571 = vrcp.f32 %v907_v8 }
 0x407   : > { %v1073_v9 = vpop.xlane.xlu0 %1072  ;;  %v911_v12 = vpop.permute.xlu1 %910 }
 0x408   : > { %1573 = vrcp.f32 %v1073_v9 }
 0x40a   : > { %v1570_v10 = vpop.eup %1569 }
 0x40b   : > { %v743_v11 = vmul.f32 %v1570_v10, %v1562_v61  ;;  %v745_v13 = vpop.permute.xlu0 %744  ;;  %v1077_v16 = vpop.permute.xlu1 %1076 }
 0x40c   : > { %1405 = vmatpush3.msra.mxu1 %v745_v13 }
 0x40d   : > { %1407 = vmatmul.mubr.msk.f32.vlgmr.msra.gmra.mrb[4].mxu1 %vm489_vm3, %v743_v11  ;;  %1414 = vmatprep.subr.mxu1 %v1818_v1 }
 0x40e   : > { %v1572_v14 = vpop.eup %1571  ;;  %1415 = vmatpush3.msra.mxu1 %v911_v12  ;;  %1416 = vmatprep.mubr.msk.f32.mxu1 %vm1817_vm0, %v1818_v1 }
 0x40f   : > { %v909_v15 = vmul.f32 %v1572_v14, %v1564_v63  ;;  %1424 = vmatprep.subr.mxu1 %v1818_v1 }
 0x411   : > { %1417 = vmatmul.mubr.msk.f32.vlgmr.msra.gmra.mrb[6].mxu1 %vm489_vm3, %v909_v15 }
 0x412   : > { %v1574_v17 = vpop.eup %1573  ;;  %1425 = vmatpush3.msra.mxu1 %v1077_v16  ;;  %1426 = vmatprep.mubr.msk.f32.mxu1 %vm1817_vm0, %v1818_v1 }
 0x413   : > { %v1075_v18 = vmul.f32 %v1574_v17, %v1566_v2 }
 0x415   : > { %1427 = vmatmul.mubr.msk.f32.vlgmr.msra.gmra.mrb[8].mxu1 %vm489_vm3, %v1075_v18 }
 0x477   : > { %v650_v19 = vpop.f32.mrb[2].mxu1 }
 0x478   : > { %v1398_v20 = vpop.f32.mrb[3].mxu1 }
 0x4e0   : > { %v816_v21 = vpop.f32.mrb[4].mxu1 }
 0x4e1   : > { %1153 = vrot.lane.b32.xlu0 %v816_v21, %s1826_s17  ;;  %v1408_v22 = vpop.f32.mrb[5].mxu1 }
 0x4e4   : > { %v982_v23 = vpop.f32.mrb[6].mxu1 }
 0x4e5   : > { %1157 = vrot.lane.b32.xlu1 %v982_v23, %s1827_s30  ;;  %v1418_v24 = vpop.f32.mrb[7].mxu1 }
 0x4e8   : > { %v1148_v25 = vpop.f32.mrb[8].mxu1 }
 0x4e9   : > { %1161 = vrot.lane.b32.xlu0 %v1148_v25, %s1828_s24  ;;  %v1428_v1 = vpop.f32.mrb[9].mxu1 }
 0x553   : > { %v1154_v26 = vpop.permute.xlu0 %1153 }
 0x554   : > { %v1164_v28 = vsel %vm489_vm3, %v650_v19, %v1154_v26 }
 0x557   : > { %v1158_v27 = vpop.permute.xlu1 %1157 }
 0x558   : > { %v1166_v29 = vsel %vm1165_vm4, %v1164_v28, %v1158_v27 }
 0x55b   : > { %v1162_v30 = vpop.permute.xlu0 %1161 }
 0x55c   : > { %v1168_v31 = vsel %vm1167_vm5, %v1166_v29, %v1162_v30 }
 0x55d   : > { %1169 = vst.msk [vmem:[%s307_s7] sm:$0xff] %vm324_vm1, %v1168_v31 }
 0x55e   : > { %1730 = shalt.err (!%p1727_p8)
}
 0x55f   : > { %s1731_s11 = scalar_lea.hbm %s2181_s12, 128  ;;  %s1735_s30 = scalar_lea.hbm %s2236_s5, 256 }
 0x560   : > { %p1732_p3 = scmp.ne.s32.totalorder %s2181_s12, %s1731_s11  ;;  %p1736_p13 = scmp.lt.u32.totalorder %s2181_s12, %s2236_s5 }
 0x561   : > { %p1737_p12 = scmp.lt.u32.totalorder %s1735_s30, %s1731_s11  ;;  %p1739_p2 = scmp.lt.u32.totalorder %s1731_s11, %s2181_s12 }
 0x562   : > { %p1733_p11 = pnand %p1732_p3, %p2253_p9 }
 0x563   : > { %p1738_p4 = por %p1737_p12, %p1736_p13 }
 0x564   : > { %p1734_p6 = pneg %p1733_p11 }
 0x565   : > { %p1740_p10 = por %p1739_p2, %p1738_p4 }
 0x567   : > { %p1741_p1 = pnand %p1740_p10, %p1734_p6 }
 0x569   : > { %1744 = shalt.err (!%p1741_p1)
}
 0x56a   : > { %1459 = dma.vmem_to_hbm [thread:$0]  (%p2253_p9), %s2183_s8, 128, %s2181_s12, %s1171_s21  }
 0x56b PF: > { %s1197_s7 = sand.u32 1, %s1787_s18   ;;  %p2254_p0 = scmp.ne.s32.totalorder %s2249_s16, 0 }
 0x56c   : > { %p2255_p7 = scmp.ge.s32.totalorder %s1807_s23, 2  ;;  %s1198_s25 = scalar_lea.sflag [#allocation5], %s1197_s7 }
 0x56e   : > { %p1479_p5 = pnand %p2255_p7, %p2254_p0 }
 0x570   : > { %1782 = dma.done.wait (!%p1479_p5), %s1198_s25, 128  }
 0x571   : > { %1784 = vsyncadd (!%p1479_p5), %s1198_s25, 4294967168  ;;  %s23_s23 = sadd.s32 1, %s1807_s23   ;;  %s2256_s18 = smov %s1791_s19 }
 0x572   : > { %p20_p8 = scmp.ge.s32.totalorder %s23_s23, 4   ;;  %s2257_s19 = smov %s1795_s20 }
 0x573   : > { %s2258_s20 = smov %s2043_s15  ;;  %s2259_s21 = smov %s1803_s22 }
 0x574   : > { %s2260_s22 = smov %s2262_s9  ;;  %22 = sbr.rel (!%p20_p8) target bundleno = 8 (0x8), region = 106 }
 0x57b   :  { %1203 = vsyncpa [#allocation4], 1 }
 0x57c   :  { %1205 = vsyncpa [#allocation4 + $0x1], 1 }
 0x57d   :  { %1206 = vsyncpa [#allocation7], 1 }
 0x57e   :  { %1207 = vsyncpa [#allocation10], 1 }
 0x57f   :  { %1208 = vsyncpa [#allocation5], 1 }
 0x580   :  { %1210 = vsyncpa [#allocation5 + $0x1], 1 }

</bundles_post_ra>
